<compile_context>
chip_gen: v6e
topology: v6e:2x2x1
jax: 0.10.0
libtpu: 0.0.40
codegen_flags: <defaults>
</compile_context>

<pallas_src>
import functools
import math

import jax
import jax.numpy as jnp
from jax.experimental import pallas as pl
from jax.experimental.pallas import tpu as pltpu


# TODO(synk): only the module's default fw_activation='silu' is implemented.
def _fwglu_blockdiag_kernel(x_ref, w12_ref, w3_ref, o_ref, *, fused_mid):
    """Block-diagonal path.

    x_ref/o_ref: (TN, H*D); w12_ref: (H*D, 2*H*E); w3_ref: (H*E, H*D).
    Three wide, lane-aligned matmuls; no per-head loop, no concat.
    """
    y = jnp.dot(x_ref[...], w12_ref[...], preferred_element_type=jnp.float32)
    x1 = y[:, :fused_mid]                                 # silu branch (f32)
    x2 = y[:, fused_mid:]                                 # gate branch (f32)
    gated = (x1 * jax.nn.sigmoid(x1) * x2).astype(w3_ref.dtype)
    o_ref[...] = jnp.dot(gated, w3_ref[...],
                         preferred_element_type=jnp.float32).astype(o_ref.dtype)


def _fwglu_perhead_kernel(x_ref, w12_ref, w3_ref, o_ref, *, num_heads,
                          head_dim, mid_dim, e_chunk):
    """Per-head path (used when head_dim % 128 == 0).

    x_ref/o_ref: (TN, H*D); w12_ref: (H, D, 2E); w3_ref: (H, E, D).
    """
    for h in range(num_heads):                            # static unroll
        lo = h * head_dim
        xh = x_ref[:, lo:lo + head_dim]                   # (TN, D), lane-aligned
        if mid_dim <= e_chunk:
            y = jnp.dot(xh, w12_ref[h], preferred_element_type=jnp.float32)
            x1 = y[:, :mid_dim]
            x2 = y[:, mid_dim:]
            gated = (x1 * jax.nn.sigmoid(x1) * x2).astype(w3_ref.dtype)
            out_h = jnp.dot(gated, w3_ref[h],
                            preferred_element_type=jnp.float32)
        else:
            # E-chunk loop: live f32 temporaries bounded to (TN, e_chunk).
            out_h = jnp.zeros((x_ref.shape[0], head_dim), jnp.float32)
            for c0 in range(0, mid_dim, e_chunk):
                ce = min(e_chunk, mid_dim - c0)
                h1 = jnp.dot(xh, w12_ref[h, :, c0:c0 + ce],
                             preferred_element_type=jnp.float32)
                g2 = jnp.dot(xh, w12_ref[h, :, mid_dim + c0:mid_dim + c0 + ce],
                             preferred_element_type=jnp.float32)
                gated = (h1 * jax.nn.sigmoid(h1) * g2).astype(w3_ref.dtype)
                out_h = out_h + jnp.dot(gated, w3_ref[h, c0:c0 + ce, :],
                                        preferred_element_type=jnp.float32)
        # Per-head direct store: no concat, no extra (TN, H*D) f32 slab.
        o_ref[:, lo:lo + head_dim] = out_h.astype(o_ref.dtype)


def fast_weight_glu(x, w1, w2, w3, *, matmul_dtype=jnp.bfloat16, block_n=None,
                    e_chunk=512, block_diag=None, vmem_limit_bytes=None):
    """FastWeightGLU forward.

    x      : (B, N, H, D)
    w1, w2 : (B, H, D, E) or — when the fast weights are shared across the
             batch — (H, D, E).  Prefer passing shared weights UNBATCHED:
             broadcasting them to (B, H, D, E) before the call materialises B
             identical copies in HBM and re-DMAs the same weights per batch
             element (pure wasted HBM bandwidth).
    w3     : (B, H, E, D) or (H, E, D)
    matmul_dtype : dtype of MXU inputs (accumulation stays f32).  Defaults to
             bfloat16 — f32 MXU inputs run at a fraction of bf16 throughput on
             v5e, v6e and v7x alike.  Pass None to keep full-precision matmuls.
    returns (B, N, H, D) in x's original dtype.
    """
    B, N, H, D = x.shape
    E = w1.shape[-1]
    HD = H * D
    HE = H * E
    batched_w = (w1.ndim == 4)
    out_dtype = x.dtype

    # Cast MXU operands once in the wrapper (not per-tile in the kernel).
    if matmul_dtype is not None:
        x = x.astype(matmul_dtype)
        w1 = w1.astype(matmul_dtype)
        w2 = w2.astype(matmul_dtype)
        w3 = w3.astype(matmul_dtype)

    xbytes = jnp.dtype(x.dtype).itemsize
    obytes = jnp.dtype(out_dtype).itemsize
    wbytes = jnp.dtype(w1.dtype).itemsize

    # Path selection: when head_dim is below the 128-lane width, per-head
    # matmuls underutilise the MXU K-dim and every head slice is a
    # lane-unaligned cut.  Block-diagonal weights make everything lane-aligned
    # at the cost of H x zero padding in the (small) weight matrices.
    if block_diag is None:
        bd_w_bytes = 3 * HD * HE * wbytes          # w12bd (HD,2HE) + w3bd (HE,HD)
        block_diag = (D % 128 != 0) and (bd_w_bytes <= (8 << 20))
    # TODO(synk): head-group block-diag (G*D >= 128/256) for large H where the
    # full HxH block-diagonal weight would exceed the VMEM budget.

    # x stays in its native (B, N, H, D) layout; collapsing (H, D) is free and
    # gives one lane-dense (TN, H*D) output slab per tile (unmasked stores
    # whenever H*D is a multiple of 128).
    x3 = x.reshape(B, N, HD)

    if block_diag:
        eye = jnp.eye(H, dtype=w1.dtype)
        if batched_w:
            w1b = jnp.einsum('bhde,hg->bhdge', w1, eye).reshape(B, HD, HE)
            w2b = jnp.einsum('bhde,hg->bhdge', w2, eye).reshape(B, HD, HE)
            w12 = jnp.concatenate([w1b, w2b], axis=-1)         # (B, HD, 2HE)
            w3f = jnp.einsum('bhed,hg->bhegd', w3, eye).reshape(B, HE, HD)
        else:
            w1b = jnp.einsum('hde,hg->hdge', w1, eye).reshape(HD, HE)
            w2b = jnp.einsum('hde,hg->hdge', w2, eye).reshape(HD, HE)
            w12 = jnp.concatenate([w1b, w2b], axis=-1)         # (HD, 2HE)
            w3f = jnp.einsum('hed,hg->hegd', w3, eye).reshape(HE, HD)
        w_block_bytes = 3 * HD * HE * wbytes
        inter_per_row = (3 * HE + HD) * 4                      # live f32 temps
        kernel = functools.partial(_fwglu_blockdiag_kernel, fused_mid=HE)
    else:
        # Fused (D, 2E) stage-1 weight: one MXU stream instead of two.
        w12 = jnp.concatenate([w1, w2], axis=-1)               # (..., H, D, 2E)
        w3f = w3
        w_block_bytes = 3 * H * D * E * wbytes
        inter_per_row = (3 * min(E, e_chunk) + D) * 4
        kernel = functools.partial(_fwglu_perhead_kernel, num_heads=H,
                                   head_dim=D, mid_dim=E, e_chunk=e_chunk)

    # Generation-aware VMEM budget (~80% of physical: leaves headroom for
    # Mosaic internal scratch / spills).  v5e/v6e: 128 MiB, v7x: 64 MiB.
    try:
        info = pltpu.get_tpu_info()
        vmem_cap = getattr(info, "vmem_capacity_bytes", None) or (64 << 20)
    except Exception:  # no TPU visible (interpret mode): be conservative
        vmem_cap = 64 << 20
    vmem_budget = int(vmem_cap * 0.8)

    # Weight blocks only change with b (or never, when batch-shared): once
    # they are big, double-buffering them is mostly wasted VMEM.
    single_buffer_w = (2 * w_block_bytes > vmem_budget // 4)
    n_w_bufs = 1 if single_buffer_w else 2

    def _footprint(tn_):
        acts = 2 * tn_ * HD * (xbytes + obytes)   # x + out, double-buffered
        wts = n_w_bufs * w_block_bytes
        inter = 2 * tn_ * inter_per_row           # f32 temporaries, 2x headroom
        return acts + wts + inter

    if block_n is None:
        tn = 16
        for cand in (1024, 512, 256, 128, 64, 32, 16):
            if _footprint(cand) <= vmem_budget:
                tn = cand
                break
    else:
        tn = block_n
    if N <= tn:
        tn = N            # full axis: always a legal block shape
    nt = pl.cdiv(N, tn)   # ragged last block is masked by Pallas (no pad copy)

    if vmem_limit_bytes is None:
        vmem_limit_bytes = vmem_budget

    def _w_spec(block_shape, index_map):
        if single_buffer_w:
            try:
                return pl.BlockSpec(block_shape, index_map,
                                    pipeline_mode=pl.Buffered(1))
            except Exception:
                pass  # older API without pipeline_mode: fall through
        return pl.BlockSpec(block_shape, index_map)

    x_spec = pl.BlockSpec((None, tn, HD), lambda b, n: (b, n, 0))
    o_spec = pl.BlockSpec((None, tn, HD), lambda b, n: (b, n, 0))
    if batched_w:
        w12_spec = _w_spec((None,) + w12.shape[1:],
                           lambda b, n: (b,) + (0,) * (w12.ndim - 1))
        w3_spec = _w_spec((None,) + w3f.shape[1:],
                          lambda b, n: (b,) + (0,) * (w3f.ndim - 1))
    else:
        w12_spec = _w_spec(w12.shape, lambda b, n: (0,) * w12.ndim)
        w3_spec = _w_spec(w3f.shape, lambda b, n: (0,) * w3f.ndim)

    # Advisory cost estimate so XLA can schedule around the kernel.
    cost = pl.CostEstimate(
        flops=6 * B * N * H * D * E,
        transcendentals=B * N * H * E,
        bytes_accessed=(B * N * HD * (xbytes + obytes)
                        + int(w12.size + w3f.size) * wbytes),
    )

    out3 = pl.pallas_call(
        kernel,
        out_shape=jax.ShapeDtypeStruct((B, N, HD), out_dtype),
        grid=(B, nt),
        in_specs=[x_spec, w12_spec, w3_spec],
        out_specs=o_spec,
        compiler_params=pltpu.CompilerParams(
            # No cross-N carry (weights are read-only, the output block index
            # changes with n), so both axes are safe to parallelise — lets
            # v7x's two TensorCores split either axis.
            dimension_semantics=("parallel", "parallel"),
            vmem_limit_bytes=int(vmem_limit_bytes),
        ),
        cost_estimate=cost,
    )(x3, w12, w3f)

    return out3.reshape(B, N, H, D)


def _xavier_uniform(key, shape, gain):
    # PyTorch xavier_uniform_ on a (h, d, e) tensor:
    # fan_in = shape[1] * prod(shape[2:]), fan_out = shape[0] * prod(shape[2:])
    receptive = math.prod(shape[2:]) if len(shape) > 2 else 1
    fan_in = shape[1] * receptive
    fan_out = shape[0] * receptive
    bound = gain * math.sqrt(6.0 / (fan_in + fan_out))
    return jax.random.uniform(key, shape, jnp.float32, -bound, bound)


def _reference(x, w1, w2, w3):
    # w1/w2: (B, H, D, E), w3: (B, H, E, D), x: (B, N, H, D)
    x1 = jax.nn.silu(jnp.einsum('bhde,bnhd->bnhe', w1, x))
    x2 = jnp.einsum('bhde,bnhd->bnhe', w2, x)
    return jnp.einsum('bhed,bnhe->bnhd', w3, x1 * x2)


def _rel_err(out, ref):
    scale = float(jnp.max(jnp.abs(ref))) + 1e-30
    return float(jnp.max(jnp.abs(out - ref))) / scale


if __name__ == "__main__":
    gain = 0.01
    key = jax.random.PRNGKey(0)

    # --- Case 1/2: module-like small shape, D=32 < 128 -> block-diag path.
    B, N, H, D, E = 2, 8, 4, 32, 64
    kx, k1, k2, k3, kx2, k4, k5, k6 = jax.random.split(key, 8)

    # Module parameters (H, D, E) / (H, E, D), xavier_uniform(gain=0.01).
    w1_p = _xavier_uniform(k1, (H, D, E), gain)
    w2_p = _xavier_uniform(k2, (H, D, E), gain)
    w3_p = _xavier_uniform(k3, (H, E, D), gain)

    # init_fast_weight: repeat 'h d e -> b h d e' (module forward signature).
    w1 = jnp.broadcast_to(w1_p[None], (B, H, D, E))
    w2 = jnp.broadcast_to(w2_p[None], (B, H, D, E))
    w3 = jnp.broadcast_to(w3_p[None], (B, H, E, D))

    x = jax.random.normal(kx, (B, N, H, D), jnp.float32)
    ref = _reference(x, w1, w2, w3)

    # 1) f32 matmuls, batched fast weights (block-diagonal path).
    out = jax.block_until_ready(fast_weight_glu(x, w1, w2, w3,
                                                matmul_dtype=None))
    assert out.shape == (B, N, H, D)
    assert _rel_err(out, ref) < 1e-4, _rel_err(out, ref)

    # 2) default bf16 matmuls, batch-shared weights passed UNBATCHED.
    out_bf16 = jax.block_until_ready(fast_weight_glu(x, w1_p, w2_p, w3_p))
    assert out_bf16.shape == (B, N, H, D)
    assert _rel_err(out_bf16, ref) < 0.1, _rel_err(out_bf16, ref)

    # --- Case 3: lane-aligned heads (D=128) -> per-head path, forced E-chunking.
    B2, N2, H2, D2, E2 = 1, 16, 2, 128, 256
    w1_q = _xavier_uniform(k4, (H2, D2, E2), gain)
    w2_q = _xavier_uniform(k5, (H2, D2, E2), gain)
    w3_q = _xavier_uniform(k6, (H2, E2, D2), gain)
    x2_in = jax.random.normal(kx2, (B2, N2, H2, D2), jnp.float32)
    ref2 = _reference(x2_in,
                      jnp.broadcast_to(w1_q[None], (B2, H2, D2, E2)),
                      jnp.broadcast_to(w2_q[None], (B2, H2, D2, E2)),
                      jnp.broadcast_to(w3_q[None], (B2, H2, E2, D2)))
    out2 = jax.block_until_ready(
        fast_weight_glu(x2_in, w1_q, w2_q, w3_q, matmul_dtype=None,
                        e_chunk=128))  # small e_chunk to exercise the chunk loop
    assert out2.shape == (B2, N2, H2, D2)
    assert _rel_err(out2, ref2) < 1e-4, _rel_err(out2, ref2)

    print("KERNEL_OK")
</pallas_src>

<mosaic_0001>
module attributes {stable_mosaic.version = 11 : i64} {
  func.func @_fwglu_blockdiag_kernel(%arg0: i32, %arg1: i32, %arg2: memref<1x8x128xf32, #tpu.memory_space<vmem>>, %arg3: memref<1x128x512xf32, #tpu.memory_space<vmem>>, %arg4: memref<1x256x128xf32, #tpu.memory_space<vmem>>, %arg5: memref<1x8x128xf32, #tpu.memory_space<vmem>>) attributes {dimension_semantics = [#tpu.dimension_semantics<parallel>, #tpu.dimension_semantics<parallel>], iteration_bounds = array<i64: 2, 1>, scalar_prefetch = 0 : i64, scratch_operands = 0 : i64, tpu.core_type = #tpu.core_type<tc>, window_params = [{transform_indices = @transform_0, window_bounds = array<i64: 1, 8, 128>}, {transform_indices = @transform_1, window_bounds = array<i64: 1, 128, 512>}, {transform_indices = @transform_2, window_bounds = array<i64: 1, 256, 128>}, {transform_indices = @transform_3, window_bounds = array<i64: 1, 8, 128>}]} {
    %c0 = arith.constant 0 : index
    %c0_0 = arith.constant 0 : index
    %c0_1 = arith.constant 0 : index
    %0 = vector.load %arg2[%c0, %c0_0, %c0_1] : memref<1x8x128xf32, #tpu.memory_space<vmem>>, vector<1x8x128xf32>
    %1 = vector.shape_cast %0 : vector<1x8x128xf32> to vector<8x128xf32>
    %c0_2 = arith.constant 0 : index
    %c0_3 = arith.constant 0 : index
    %c0_4 = arith.constant 0 : index
    %2 = vector.load %arg3[%c0_2, %c0_3, %c0_4] : memref<1x128x512xf32, #tpu.memory_space<vmem>>, vector<1x128x512xf32>
    %3 = vector.shape_cast %2 : vector<1x128x512xf32> to vector<128x512xf32>
    %cst = arith.constant dense<0.000000e+00> : vector<8x512xf32>
    %4 = tpu.matmul %1, %3, %cst {dimension_numbers = #tpu.dot_dimension_numbers<[1], [0], [0], [1], [0, 0, 1, 1], [], []>} : vector<8x128xf32>, vector<128x512xf32>, vector<8x512xf32> -> vector<8x512xf32>
    %5 = vector.extract_strided_slice %4 {offsets = [0, 0], sizes = [8, 256], strides = [1, 1]} : vector<8x512xf32> to vector<8x256xf32>
    %6 = vector.extract_strided_slice %4 {offsets = [0, 256], sizes = [8, 256], strides = [1, 1]} : vector<8x512xf32> to vector<8x256xf32>
    %7 = arith.negf %5 : vector<8x256xf32>
    %8 = math.exp %7 : vector<8x256xf32>
    %cst_5 = arith.constant 1.000000e+00 : f32
    %9 = vector.broadcast %cst_5 : f32 to vector<8x256xf32>
    %10 = arith.addf %9, %8 : vector<8x256xf32>
    %11 = arith.divf %9, %10 : vector<8x256xf32>
    %12 = arith.mulf %5, %11 : vector<8x256xf32>
    %13 = arith.mulf %12, %6 : vector<8x256xf32>
    %c0_6 = arith.constant 0 : index
    %c0_7 = arith.constant 0 : index
    %c0_8 = arith.constant 0 : index
    %14 = vector.load %arg4[%c0_6, %c0_7, %c0_8] : memref<1x256x128xf32, #tpu.memory_space<vmem>>, vector<1x256x128xf32>
    %15 = vector.shape_cast %14 : vector<1x256x128xf32> to vector<256x128xf32>
    %cst_9 = arith.constant dense<0.000000e+00> : vector<8x128xf32>
    %16 = tpu.matmul %13, %15, %cst_9 {dimension_numbers = #tpu.dot_dimension_numbers<[1], [0], [0], [1], [0, 0, 1, 1], [], []>} : vector<8x256xf32>, vector<256x128xf32>, vector<8x128xf32> -> vector<8x128xf32>
    %c0_10 = arith.constant 0 : index
    %c0_11 = arith.constant 0 : index
    %c0_12 = arith.constant 0 : index
    %17 = vector.load %arg5[%c0_10, %c0_11, %c0_12] : memref<1x8x128xf32, #tpu.memory_space<vmem>>, vector<1x8x128xf32>
    %18 = vector.shape_cast %17 : vector<1x8x128xf32> to vector<8x128xf32>
    %19 = vector.shape_cast %16 : vector<8x128xf32> to vector<1x8x128xf32>
    tpu.vector_store %arg5[%c0_10, %c0_11, %c0_12], %19 {strides = array<i32>} : memref<1x8x128xf32, #tpu.memory_space<vmem>>, vector<1x8x128xf32>,
    return
  }
  func.func @transform_0(%arg0: i32, %arg1: i32) -> (i32, i32, i32) {
    %c0_i32 = arith.constant 0 : i32
    %c0_i32_0 = arith.constant 0 : i32
    return %arg0, %arg1, %c0_i32 : i32, i32, i32
  }
  func.func @transform_1(%arg0: i32, %arg1: i32) -> (i32, i32, i32) {
    %c0_i32 = arith.constant 0 : i32
    %c0_i32_0 = arith.constant 0 : i32
    %c0_i32_1 = arith.constant 0 : i32
    return %arg0, %c0_i32, %c0_i32_0 : i32, i32, i32
  }
  func.func @transform_2(%arg0: i32, %arg1: i32) -> (i32, i32, i32) {
    %c0_i32 = arith.constant 0 : i32
    %c0_i32_0 = arith.constant 0 : i32
    %c0_i32_1 = arith.constant 0 : i32
    return %arg0, %c0_i32, %c0_i32_0 : i32, i32, i32
  }
  func.func @transform_3(%arg0: i32, %arg1: i32) -> (i32, i32, i32) {
    %c0_i32 = arith.constant 0 : i32
    %c0_i32_0 = arith.constant 0 : i32
    return %arg0, %arg1, %c0_i32 : i32, i32, i32
  }
}

</mosaic_0001>

<bundles_post_ra>
// kernel: tpu_custom_call.1
= control target key start
LH: loop header
LB: loop body
LE: loop exit
PB: predicated region body
PF: predicated region fallthrough
CT: control target
= control target key end

     0   :  { %s1374_s0 = inlined_call_operand.hbm [shape: f32[2,8,128], index: 0, kind: input, shape index: {}]   ;;  %s1375_s1 = inlined_call_operand.hbm [shape: f32[2,128,512], index: 1, kind: input, shape index: {}]   ;;  %s1376_s2 = inlined_call_operand.hbm [shape: f32[2,256,128], index: 2, kind: input, shape index: {}]   ;;  %s1377_s3 = inlined_call_operand.hbm [shape: f32[2,8,128], index: 3, kind: output, shape index: {}]  }
   0x1   :  { %1379 = sst [smem:[#allocation14_spill]] %s1375_s1 }
   0x2   :  { %8 = vsyncpa [#allocation3], 0 }
   0x3   :  { %10 = vsyncpa [#allocation3 + $0x1], 0 }
   0x4   :  { %11 = vsyncpa [#allocation6], 0 }
   0x5   :  { %13 = vsyncpa [#allocation6 + $0x1], 0 }
   0x6   :  { %14 = vsyncpa [#allocation4], 0 }
   0x7   :  { %16 = vsyncpa [#allocation4 + $0x1], 0  ;;  %s1088_s12 = smov 0   ;;  %s1090_s13 = smov 0  }
   0x8   :  { %s1092_s14 = smov 0   ;;  %s1094_s15 = smov 0  }
   0x9   :  { %s1096_s16 = smov 0   ;;  %s1098_s17 = smov 0  }
   0xa LB: > { %s1119_s18 = sadd.s32 4294967295, %s1057_s17   ;;  %s745_s19 = sadd.s32 4294967294, %s1057_s17   ;;  %s1057_s17 = sphi %s1098_s17, %s22_s17   ;;  %s1053_s16 = sphi %s1096_s16, %s1396_s16   ;;  %s1049_s15 = sphi %s1094_s15, %s1395_s15   ;;  %s1045_s14 = sphi %s1092_s14, %s1394_s14   ;;  %s1041_s13 = sphi %s1090_s13, %s1393_s13   ;;  %s1037_s12 = sphi %s1088_s12, %s1392_s12  }
   0xb   : > { %s34_s20 = sadd.s32 1, %s1053_s16  ;;  %s43_s21 = sadd.s32 1, %s1045_s14 }
   0xc   : > { %p36_p0 = scmp.ge.s32.totalorder %s34_s20, 2  ;;  %p50_p1 = scmp.ne.s32.totalorder %s1045_s14, %s1041_s13 }
   0xd   : > { %p51_p2 = scmp.eq.s32.totalorder %s1057_s17, 0  ;;  %p56_p3 = scmp.ne.s32.totalorder %s1041_s13, %s1037_s12 }
   0xe   : > { %s1398_s20 = smov (%p36_p0, %s34_s20), 0  ;;  %p57_p5 = scmp.eq.s32.totalorder %s1119_s18, 0 }
   0xf   : > { %1380 = sst [smem:[#allocation12_spill]] %s1398_s20  ;;  %p1131_p4 = por %p51_p2, %p50_p1 }
  0x10   : > { %s38_s23 = ssub.s32 %s1053_s16, %s1398_s20  ;;  %p134_p6 = scmp.eq.s32.totalorder %s1119_s18, 1 }
  0x11   : > { %p41_p7 = scmp.eq.s32.totalorder %s38_s23, 0  ;;  %p1139_p8 = por %p57_p5, %p56_p3 }
  0x12   : > { %p1143_p9 = por %p134_p6, %p50_p1  ;;  %p140_p10 = scmp.eq.s32.totalorder %s745_s19, 1 }
  0x13   : > { %s1148_s26 = scalar_select %p41_p7, %s1045_s14, %s43_s21  }
  0x14   : > { %p1150_p11 = por %p140_p10, %p56_p3  ;;  %p826_p13 = scmp.lt.s32.totalorder %s1057_s17, 2 }
  0x15   : > { %1384 = sst [smem:[#allocation13_spill]] %s1148_s26  ;;  %s1157_s28 = sand.u32 1, %s1045_s14  }
  0x16   : > { %s179_s29 = sand.u32 1, %s1057_s17   ;;  %s750_s30 = sshll.u32 %s1157_s28, 9 }
  0x17   : > { %p1163_p0 = pnand %p826_p13, %p1131_p4  ;;  %s767_s5 = sshll.u32 %s1053_s16, 13 }
  0x18   : > { %s1387_s1 = sld [smem:[#allocation14_spill]]  ;;  %s183_s9 = scalar_lea.vmem [#allocation5], %s750_s30 }
  0x19   : > { %s190_s10 = sshll.u32 %s183_s9, 4  ;;  %s1171_s11 = scalar_lea.sflag [#allocation6], %s179_s29  ;;  %s191_s10 = int_to_ptr.vmem [resolvable:$true] %s190_s10 }
  0x1a   : > { %p891_p1 = pneg %p1163_p0  ;;  %s902_s19 = scalar_lea.vmem %s191_s10, 8192 }
  0x1b   : > { %p903_p2 = scmp.ne.s32.totalorder %s191_s10, %s902_s19  ;;  %s1059_s21 = smov [#allocation5]  }
  0x1c   : > { %s907_s22 = sshll.u32 %s1059_s21, 4  ;;  %s908_s22 = int_to_ptr.vmem [resolvable:$false] %s907_s22 }
  0x1d   : > { %p905_p3 = pnand %p903_p2, %p891_p1  ;;  %s909_s23 = scalar_lea.vmem %s908_s22, 16384 }
  0x1e   : > { %s189_s8 = scalar_lea.hbm %s1387_s1, %s767_s5  ;;  %p910_p5 = scmp.lt.s32.totalorder %s191_s10, %s908_s22 }
  0x1f   : > { %p906_p4 = pneg %p905_p3  ;;  %p911_p6 = scmp.lt.s32.totalorder %s909_s23, %s902_s19 }
  0x21   : > { %p912_p7 = por %p911_p6, %p910_p5 }
  0x23   : > { %p913_p10 = pnand %p912_p7, %p906_p4 }
  0x25   : > { %916 = shalt.err (!%p913_p10)
}
  0x26   : > { %s1060_s30 = smov 512   ;;  %s1061_s29 = smov 32  }
  0x27   : > { %818 = dma.hbm_to_vmem [thread:$0]  (!%p1163_p0), %s189_s8, 8192, %s191_s10, %s1171_s11, %s1060_s30, %s1060_s30, %s1061_s29  }
  0x28   : > { %p756_p13 = scmp.ge.s32.totalorder %s1057_s17, 1  ;;  %p219_p2 = scmp.lt.s32.totalorder %s1057_s17, 3 }
  0x29   : > { %s748_s6 = sshll.u32 %s1157_s28, 3  ;;  %s749_s7 = sshll.u32 %s1053_s16, 7 }
  0x2a   : > { %p1183_p3 = pnand %p756_p13, %p219_p2  ;;  %s170_s21 = scalar_lea.hbm %s1374_s0, %s749_s7 }
  0x2b   : > { %s164_s22 = scalar_lea.vmem [#allocation2], %s748_s6  ;;  %s753_s1 = sshll.u32 %s1157_s28, 8 }
  0x2c   : > { %s172_s23 = sshll.u32 %s164_s22, 4  ;;  %s161_s20 = scalar_lea.sflag [#allocation3], %s1157_s28  ;;  %s173_s23 = int_to_ptr.vmem [resolvable:$true] %s172_s23 }
  0x2d   : > { %s930_s26 = scalar_lea.vmem %s173_s23, 128  ;;  %s1062_s8 = smov [#allocation2]  }
  0x2e   : > { %p931_p4 = scmp.ne.s32.totalorder %s173_s23, %s930_s26  ;;  %s935_s10 = sshll.u32 %s1062_s8, 4  ;;  %s936_s10 = int_to_ptr.vmem [resolvable:$false] %s935_s10 }
  0x2f   : > { %s937_s30 = scalar_lea.vmem %s936_s10, 256  ;;  %p938_p7 = scmp.lt.s32.totalorder %s173_s23, %s936_s10 }
  0x30   : > { %p933_p5 = pnand %p931_p4, %p891_p1  ;;  %p939_p10 = scmp.lt.s32.totalorder %s937_s30, %s930_s26 }
  0x32   : > { %p934_p6 = pneg %p933_p5  ;;  %p940_p13 = por %p939_p10, %p938_p7 }
  0x34   : > { %p941_p2 = pnand %p940_p13, %p934_p6 }
  0x36   : > { %944 = shalt.err (!%p941_p2)
}
  0x37   : > { %815 = dma.hbm_to_vmem [thread:$0]  (!%p1163_p0), %s170_s21, 128, %s173_s23, %s161_s20  }
  0x38   : > { %s768_s28 = sshll.u32 %s1053_s16, 12  ;;  %s204_s29 = scalar_lea.vmem [#allocation7], %s753_s1 }
  0x39   : > { %s211_s6 = sshll.u32 %s204_s29, 4  ;;  %s210_s19 = scalar_lea.hbm %s1376_s2, %s768_s28  ;;  %s212_s6 = int_to_ptr.vmem [resolvable:$true] %s211_s6 }
  0x3a   : > { %s958_s22 = scalar_lea.vmem %s212_s6, 4096  ;;  %s1063_s26 = smov [#allocation7]  }
  0x3b   : > { %p959_p4 = scmp.ne.s32.totalorder %s212_s6, %s958_s22  ;;  %s963_s8 = sshll.u32 %s1063_s26, 4  ;;  %s964_s8 = int_to_ptr.vmem [resolvable:$false] %s963_s8 }
  0x3c   : > { %s965_s10 = scalar_lea.vmem %s964_s8, 8192  ;;  %p966_p7 = scmp.lt.s32.totalorder %s212_s6, %s964_s8 }
  0x3d   : > { %p961_p5 = pnand %p959_p4, %p891_p1  ;;  %p967_p10 = scmp.lt.s32.totalorder %s965_s10, %s958_s22 }
  0x3f   : > { %p962_p6 = pneg %p961_p5  ;;  %p968_p13 = por %p967_p10, %p966_p7 }
  0x41   : > { %p969_p2 = pnand %p968_p13, %p962_p6 }
  0x43   : > { %972 = shalt.err (!%p969_p2)
}
  0x44   : > { %s1064_s1 = smov 128   ;;  %s1065_s20 = smov 8  }
  0x45   : > { %821 = dma.hbm_to_vmem [thread:$0]  (!%p1163_p0), %s210_s19, 4096, %s212_s6, %s1171_s11, %s1064_s1, %s1064_s1, %s1065_s20  }
  0x46   : > { %223 = sbr.rel (%p1183_p3) target bundleno = 555 (0x22b), region = 32  ;;  %s1212_s21 = sand.u32 (!%p1183_p3), 1, %s1041_s13  }
  0x47   : > { %s757_s23 = sshll.u32 (!%p1183_p3), %s1212_s21, 3  ;;  %s226_s30 = scalar_lea.sflag (!%p1183_p3), [#allocation3], %s1212_s21 }
  0x48   : > { %s1218_s28 = scalar_lea.vmem (!%p1183_p3), [#allocation2], %s757_s23 }
  0x4b   : > { %1024 = dma.done.wait (%p1139_p8), %s226_s30, 128  }
  0x4c   : > { %1026 = vsyncadd (%p1139_p8), %s226_s30, 4294967168  ;;  %s234_s4 = sand.u32 1, %s1119_s18   ;;  %s758_s11 = sshll.u32 %s1212_s21, 9 }
  0x4d   : > { %s235_s5 = scalar_lea.sflag [#allocation6], %s234_s4  ;;  %s1226_s29 = scalar_lea.vmem [#allocation5], %s758_s11 }
  0x4e   : > { %1028 = dma.done.wait (%p1139_p8), %s235_s5, 12288  }
  0x4f   : > { %1030 = vsyncadd (%p1139_p8), %s235_s5, 4294955008  ;;  %v1066_v0 = vmov 0.0   ;;  %v342_v1 = vld [vmem:[%s1226_s29 + $0x1e8] sm:$0xff]  ;;  %v341_v2 = vld [vmem:[%s1226_s29 + $0x1e0] sm:$0xff]  ;;  %s759_s18 = sshll.u32 %s1212_s21, 8  ;;  %s764_s6 = sshll.u32 %s1049_s15, 7 }
  0x50   : > { %409 = vmatprep.mubr.f32.mxu0 %v1066_v0  ;;  %480 = vmatprep.mubr.f32.mxu1 %v1066_v0  ;;  %v338_v3 = vld [vmem:[%s1226_s29 + $0x1c8] sm:$0xff]  ;;  %v337_v4 = vld [vmem:[%s1226_s29 + $0x1c0] sm:$0xff]  ;;  %v344_v15 = vld [vmem:[%s1226_s29 + $0x1f8] sm:$0xff]  ;;  %s1298_s24 = scalar_lea.vmem [#allocation7], %s759_s18  ;;  %s279_s7 = scalar_lea.vmem [#allocation8], %s757_s23 }
  0x51   : > { %345 = vmatprep.subr.mxu0 %v342_v1  ;;  %v334_v5 = vld [vmem:[%s1226_s29 + $0x1a8] sm:$0xff]  ;;  %v333_v6 = vld [vmem:[%s1226_s29 + $0x1a0] sm:$0xff]  ;;  %v343_v16 = vld [vmem:[%s1226_s29 + $0x1f0] sm:$0xff]  ;;  %416 = vmatprep.subr.mxu1 %v344_v15  ;;  %s621_s9 = sshll.u32 %s279_s7, 4  ;;  %s619_s26 = scalar_lea.hbm %s1377_s3, %s764_s6  ;;  %s622_s9 = int_to_ptr.vmem [resolvable:$true] %s621_s9 }
  0x52   : > { %346 = vmatpush1.msra.mxu0 %v341_v2  ;;  %v330_v7 = vld [vmem:[%s1226_s29 + $0x188] sm:$0xff]  ;;  %v329_v8 = vld [vmem:[%s1226_s29 + $0x180] sm:$0xff]  ;;  %v340_v17 = vld [vmem:[%s1226_s29 + $0x1d8] sm:$0xff]  ;;  %417 = vmatpush1.msra.mxu1 %v343_v16  ;;  %s607_s8 = scalar_lea.sflag [#allocation4], %s1212_s21  ;;  %s973_s10 = scalar_lea.vmem %s622_s9, 128 }
  0x53   : > { %347 = vmatprep.subr.mxu0 %v338_v3  ;;  %v326_v9 = vld [vmem:[%s1226_s29 + $0x168] sm:$0xff]  ;;  %v325_v10 = vld [vmem:[%s1226_s29 + $0x160] sm:$0xff]  ;;  %v339_v19 = vld [vmem:[%s1226_s29 + $0x1d0] sm:$0xff]  ;;  %418 = vmatprep.subr.mxu1 %v340_v17  ;;  %p974_p8 = scmp.ne.s32.totalorder %s622_s9, %s973_s10  ;;  %s1067_s1 = smov [#allocation8]  }
  0x54   : > { %348 = vmatpush1.msra.mxu0 %v337_v4  ;;  %v322_v11 = vld [vmem:[%s1226_s29 + $0x148] sm:$0xff]  ;;  %v321_v12 = vld [vmem:[%s1226_s29 + $0x140] sm:$0xff]  ;;  %v336_v21 = vld [vmem:[%s1226_s29 + $0x1b8] sm:$0xff]  ;;  %419 = vmatpush1.msra.mxu1 %v339_v19  ;;  %s977_s20 = sshll.u32 %s1067_s1, 4  ;;  %s978_s20 = int_to_ptr.vmem [resolvable:$false] %s977_s20 }
  0x55   : > { %349 = vmatprep.subr.mxu0 %v334_v5  ;;  %v318_v13 = vld [vmem:[%s1226_s29 + $0x128] sm:$0xff]  ;;  %v317_v14 = vld [vmem:[%s1226_s29 + $0x120] sm:$0xff]  ;;  %v335_v23 = vld [vmem:[%s1226_s29 + $0x1b0] sm:$0xff]  ;;  %420 = vmatprep.subr.mxu1 %v336_v21  ;;  %p975_p0 = pnand %p974_p8, %p1143_p9  ;;  %s979_s15 = scalar_lea.vmem %s978_s20, 256 }
  0x56   : > { %350 = vmatpush1.msra.mxu0 %v333_v6  ;;  %v314_v18 = vld [vmem:[%s1226_s29 + $0x108] sm:$0xff]  ;;  %v313_v20 = vld [vmem:[%s1226_s29 + $0x100] sm:$0xff]  ;;  %v332_v25 = vld [vmem:[%s1226_s29 + $0x198] sm:$0xff]  ;;  %421 = vmatpush1.msra.mxu1 %v335_v23  ;;  %p980_p3 = scmp.lt.s32.totalorder %s622_s9, %s978_s20  ;;  %p981_p4 = scmp.lt.s32.totalorder %s979_s15, %s973_s10 }
  0x57   : > { %351 = vmatprep.subr.mxu0 %v330_v7  ;;  %v310_v22 = vld [vmem:[%s1226_s29 + $0xe8] sm:$0xff]  ;;  %v309_v24 = vld [vmem:[%s1226_s29 + $0xe0] sm:$0xff]  ;;  %v331_v27 = vld [vmem:[%s1226_s29 + $0x190] sm:$0xff]  ;;  %422 = vmatprep.subr.mxu1 %v332_v25  ;;  %p976_p1 = pneg %p975_p0 }
  0x58   : > { %352 = vmatpush1.msra.mxu0 %v329_v8  ;;  %v306_v26 = vld [vmem:[%s1226_s29 + $0xc8] sm:$0xff]  ;;  %v305_v28 = vld [vmem:[%s1226_s29 + $0xc0] sm:$0xff]  ;;  %v328_v29 = vld [vmem:[%s1226_s29 + $0x178] sm:$0xff]  ;;  %423 = vmatpush1.msra.mxu1 %v331_v27  ;;  %p982_p5 = por %p981_p4, %p980_p3 }
  0x59   : > { %353 = vmatprep.subr.mxu0 %v326_v9  ;;  %v302_v30 = vld [vmem:[%s1226_s29 + $0xa8] sm:$0xff]  ;;  %v327_v31 = vld [vmem:[%s1226_s29 + $0x170] sm:$0xff]  ;;  %v301_v32 = vld [vmem:[%s1226_s29 + $0xa0] sm:$0xff]  ;;  %424 = vmatprep.subr.mxu1 %v328_v29 }
  0x5a   : > { %354 = vmatpush1.msra.mxu0 %v325_v10  ;;  %v324_v33 = vld [vmem:[%s1226_s29 + $0x158] sm:$0xff]  ;;  %v298_v34 = vld [vmem:[%s1226_s29 + $0x88] sm:$0xff]  ;;  %v323_v35 = vld [vmem:[%s1226_s29 + $0x150] sm:$0xff]  ;;  %425 = vmatpush1.msra.mxu1 %v327_v31  ;;  %p983_p6 = pnand %p982_p5, %p976_p1 }
  0x5b   : > { %355 = vmatprep.subr.mxu0 %v322_v11  ;;  %v297_v36 = vld [vmem:[%s1226_s29 + $0x80] sm:$0xff]  ;;  %v320_v37 = vld [vmem:[%s1226_s29 + $0x138] sm:$0xff]  ;;  %v294_v38 = vld [vmem:[%s1226_s29 + $0x68] sm:$0xff]  ;;  %426 = vmatprep.subr.mxu1 %v324_v33 }
  0x5c   : > { %356 = vmatpush1.msra.mxu0 %v321_v12  ;;  %v319_v39 = vld [vmem:[%s1226_s29 + $0x130] sm:$0xff]  ;;  %v293_v40 = vld [vmem:[%s1226_s29 + $0x60] sm:$0xff]  ;;  %427 = vmatpush1.msra.mxu1 %v323_v35  ;;  %v316_v41 = vld [vmem:[%s1226_s29 + $0x118] sm:$0xff] }
  0x5d   : > { %357 = vmatprep.subr.mxu0 %v318_v13  ;;  %v290_v42 = vld [vmem:[%s1226_s29 + $0x48] sm:$0xff]  ;;  %428 = vmatprep.subr.mxu1 %v320_v37  ;;  %v315_v43 = vld [vmem:[%s1226_s29 + $0x110] sm:$0xff]  ;;  %v289_v44 = vld [vmem:[%s1226_s29 + $0x40] sm:$0xff] }
  0x5e   : > { %358 = vmatpush1.msra.mxu0 %v317_v14  ;;  %429 = vmatpush1.msra.mxu1 %v319_v39  ;;  %v312_v45 = vld [vmem:[%s1226_s29 + $0xf8] sm:$0xff]  ;;  %v286_v46 = vld [vmem:[%s1226_s29 + $0x28] sm:$0xff]  ;;  %v311_v47 = vld [vmem:[%s1226_s29 + $0xf0] sm:$0xff] }
  0x5f   : > { %359 = vmatprep.subr.mxu0 %v314_v18  ;;  %430 = vmatprep.subr.mxu1 %v316_v41  ;;  %v285_v48 = vld [vmem:[%s1226_s29 + $0x20] sm:$0xff]  ;;  %v308_v49 = vld [vmem:[%s1226_s29 + $0xd8] sm:$0xff]  ;;  %v282_v50 = vld [vmem:[%s1226_s29 + $0x8] sm:$0xff] }
  0x60   : > { %360 = vmatpush1.msra.mxu0 %v313_v20  ;;  %431 = vmatpush1.msra.mxu1 %v315_v43  ;;  %v307_v51 = vld [vmem:[%s1226_s29 + $0xd0] sm:$0xff]  ;;  %v281_v52 = vld [vmem:[%s1226_s29] sm:$0xff]  ;;  %v304_v53 = vld [vmem:[%s1226_s29 + $0xb8] sm:$0xff] }
  0x61   : > { %361 = vmatprep.subr.mxu0 %v310_v22  ;;  %432 = vmatprep.subr.mxu1 %v312_v45  ;;  %v280_v54 = vld [vmem:[%s1218_s28] sm:$0xff]  ;;  %v532_v6 = vld [vmem:[%s1298_s24 + $0xe8] sm:$0xff]  ;;  %v531_v8 = vld [vmem:[%s1298_s24 + $0xe0] sm:$0xff] }
  0x62   : > { %362 = vmatpush1.msra.mxu0 %v309_v24  ;;  %433 = vmatpush1.msra.mxu1 %v311_v47  ;;  %v303_v55 = vld [vmem:[%s1226_s29 + $0xb0] sm:$0xff]  ;;  %v300_v56 = vld [vmem:[%s1226_s29 + $0x98] sm:$0xff]  ;;  %v516_v7 = vld [vmem:[%s1298_s24 + $0x68] sm:$0xff] }
  0x63   : > { %363 = vmatprep.subr.mxu0 %v306_v26  ;;  %434 = vmatprep.subr.mxu1 %v308_v49  ;;  %v299_v57 = vld [vmem:[%s1226_s29 + $0x90] sm:$0xff]  ;;  %v296_v58 = vld [vmem:[%s1226_s29 + $0x78] sm:$0xff]  ;;  %v515_v9 = vld [vmem:[%s1298_s24 + $0x60] sm:$0xff] }
  0x64   : > { %364 = vmatpush1.msra.mxu0 %v305_v28  ;;  %435 = vmatpush1.msra.mxu1 %v307_v51  ;;  %v295_v59 = vld [vmem:[%s1226_s29 + $0x70] sm:$0xff]  ;;  %v292_v60 = vld [vmem:[%s1226_s29 + $0x58] sm:$0xff]  ;;  %v528_v14 = vld [vmem:[%s1298_s24 + $0xc8] sm:$0xff] }
  0x65   : > { %365 = vmatprep.subr.mxu0 %v302_v30  ;;  %436 = vmatprep.subr.mxu1 %v304_v53  ;;  %v291_v61 = vld [vmem:[%s1226_s29 + $0x50] sm:$0xff]  ;;  %v288_v62 = vld [vmem:[%s1226_s29 + $0x38] sm:$0xff]  ;;  %v512_v15 = vld [vmem:[%s1298_s24 + $0x48] sm:$0xff] }
  0x66   : > { %366 = vmatpush1.msra.mxu0 %v301_v32  ;;  %437 = vmatpush1.msra.mxu1 %v303_v55  ;;  %v287_v63 = vld [vmem:[%s1226_s29 + $0x30] sm:$0xff]  ;;  %v284_v0 = vld [vmem:[%s1226_s29 + $0x18] sm:$0xff]  ;;  %v527_v16 = vld [vmem:[%s1298_s24 + $0xc0] sm:$0xff] }
  0x67   : > { %367 = vmatprep.subr.mxu0 %v298_v34  ;;  %438 = vmatprep.subr.mxu1 %v300_v56  ;;  %v283_v1 = vld [vmem:[%s1226_s29 + $0x10] sm:$0xff]  ;;  %v534_v2 = vld [vmem:[%s1298_s24 + $0xf8] sm:$0xff]  ;;  %v511_v17 = vld [vmem:[%s1298_s24 + $0x40] sm:$0xff] }
  0x68   : > { %368 = vmatpush1.msra.mxu0 %v297_v36  ;;  %439 = vmatpush1.msra.mxu1 %v299_v57  ;;  %v518_v3 = vld [vmem:[%s1298_s24 + $0x78] sm:$0xff]  ;;  %v533_v4 = vld [vmem:[%s1298_s24 + $0xf0] sm:$0xff]  ;;  %v524_v22 = vld [vmem:[%s1298_s24 + $0xa8] sm:$0xff] }
  0x69   : > { %369 = vmatprep.subr.mxu0 %v294_v38  ;;  %440 = vmatprep.subr.mxu1 %v296_v58  ;;  %v517_v5 = vld [vmem:[%s1298_s24 + $0x70] sm:$0xff]  ;;  %v530_v10 = vld [vmem:[%s1298_s24 + $0xd8] sm:$0xff]  ;;  %v508_v23 = vld [vmem:[%s1298_s24 + $0x28] sm:$0xff] }
  0x6a   : > { %370 = vmatpush1.msra.mxu0 %v293_v40  ;;  %441 = vmatpush1.msra.mxu1 %v295_v59  ;;  %v514_v11 = vld [vmem:[%s1298_s24 + $0x58] sm:$0xff]  ;;  %v529_v12 = vld [vmem:[%s1298_s24 + $0xd0] sm:$0xff]  ;;  %v523_v24 = vld [vmem:[%s1298_s24 + $0xa0] sm:$0xff] }
  0x6b   : > { %371 = vmatprep.subr.mxu0 %v290_v42  ;;  %442 = vmatprep.subr.mxu1 %v292_v60  ;;  %v513_v13 = vld [vmem:[%s1298_s24 + $0x50] sm:$0xff]  ;;  %v526_v18 = vld [vmem:[%s1298_s24 + $0xb8] sm:$0xff]  ;;  %v507_v25 = vld [vmem:[%s1298_s24 + $0x20] sm:$0xff] }
  0x6c   : > { %372 = vmatpush1.msra.mxu0 %v289_v44  ;;  %443 = vmatpush1.msra.mxu1 %v291_v61  ;;  %v510_v19 = vld [vmem:[%s1298_s24 + $0x38] sm:$0xff]  ;;  %v525_v20 = vld [vmem:[%s1298_s24 + $0xb0] sm:$0xff]  ;;  %v520_v30 = vld [vmem:[%s1298_s24 + $0x88] sm:$0xff] }
  0x6d   : > { %373 = vmatprep.subr.mxu0 %v286_v46  ;;  %444 = vmatprep.subr.mxu1 %v288_v62  ;;  %v509_v21 = vld [vmem:[%s1298_s24 + $0x30] sm:$0xff]  ;;  %v522_v26 = vld [vmem:[%s1298_s24 + $0x98] sm:$0xff]  ;;  %v504_v31 = vld [vmem:[%s1298_s24 + $0x8] sm:$0xff] }
  0x6e   : > { %374 = vmatpush1.msra.mxu0 %v285_v48  ;;  %445 = vmatpush1.msra.mxu1 %v287_v63  ;;  %v506_v27 = vld [vmem:[%s1298_s24 + $0x18] sm:$0xff]  ;;  %v521_v28 = vld [vmem:[%s1298_s24 + $0x90] sm:$0xff]  ;;  %v519_v32 = vld [vmem:[%s1298_s24 + $0x80] sm:$0xff] }
  0x6f   : > { %375 = vmatprep.subr.mxu0 %v282_v50  ;;  %446 = vmatprep.subr.mxu1 %v284_v0  ;;  %v505_v29 = vld [vmem:[%s1298_s24 + $0x10] sm:$0xff]  ;;  %v503_v33 = vld [vmem:[%s1298_s24] sm:$0xff] }
  0x70   : > { %376 = vmatpush1.msra.mxu0 %v281_v52  ;;  %447 = vmatpush1.msra.mxu1 %v283_v1 }
  0x71   : > { %410 = vmatmul.mubr.f32.vlgmr.msra.gmra.mxu0 %v280_v54  ;;  %481 = vmatmul.mubr.f32.vlgmr.msra.gmra.mxu1 %v280_v54 }
  0x72   : > { %769 = vmatprep.subr.mxu0 %v534_v2 }
  0x73   : > { %770 = vmatpush3.msra.mxu0 %v518_v3 }
  0x74   : > { %771 = vmatprep.subr.mxu0 %v533_v4 }
  0x75   : > { %772 = vmatpush3.msra.mxu0 %v517_v5 }
  0x76   : > { %773 = vmatprep.subr.mxu0 %v532_v6 }
  0x77   : > { %774 = vmatpush3.msra.mxu0 %v516_v7 }
  0x78   : > { %775 = vmatprep.subr.mxu0 %v531_v8 }
  0x79   : > { %776 = vmatpush3.msra.mxu0 %v515_v9 }
  0x7a   : > { %777 = vmatprep.subr.mxu0 %v530_v10 }
  0x7b   : > { %778 = vmatpush3.msra.mxu0 %v514_v11 }
  0x7c   : > { %779 = vmatprep.subr.mxu0 %v529_v12 }
  0x7d   : > { %780 = vmatpush3.msra.mxu0 %v513_v13 }
  0x7e   : > { %781 = vmatprep.subr.mxu0 %v528_v14 }
  0x7f   : > { %782 = vmatpush3.msra.mxu0 %v512_v15 }
  0x80   : > { %783 = vmatprep.subr.mxu0 %v527_v16 }
  0x81   : > { %784 = vmatpush3.msra.mxu0 %v511_v17 }
  0x82   : > { %785 = vmatprep.subr.mxu0 %v526_v18 }
  0x83   : > { %786 = vmatpush3.msra.mxu0 %v510_v19 }
  0x84   : > { %787 = vmatprep.subr.mxu0 %v525_v20 }
  0x85   : > { %788 = vmatpush3.msra.mxu0 %v509_v21 }
  0x86   : > { %789 = vmatprep.subr.mxu0 %v524_v22 }
  0x87   : > { %790 = vmatpush3.msra.mxu0 %v508_v23 }
  0x88   : > { %791 = vmatprep.subr.mxu0 %v523_v24 }
  0x89   : > { %792 = vmatpush3.msra.mxu0 %v507_v25 }
  0x8a   : > { %793 = vmatprep.subr.mxu0 %v522_v26 }
  0x8b   : > { %794 = vmatpush3.msra.mxu0 %v506_v27 }
  0x8c   : > { %795 = vmatprep.subr.mxu0 %v521_v28 }
  0x8d   : > { %796 = vmatpush3.msra.mxu0 %v505_v29 }
  0x8e   : > { %797 = vmatprep.subr.mxu0 %v520_v30 }
  0x8f   : > { %798 = vmatpush3.msra.mxu0 %v504_v31 }
  0x90   : > { %799 = vmatprep.subr.mxu0 %v519_v32 }
  0x91   : > { %800 = vmatpush3.msra.mxu0 %v503_v33 }
 0x131   : > { %v411_v34 = vpop.f32.mrf.mxu0  ;;  %v482_v43 = vpop.f32.mrf.mxu1 }
 0x132   : > { %v761_v35 = vmul.f32 -1.442695, %v411_v34 }
 0x133   : > { %v413_v36 = vpop.f32.mrf.mxu0  ;;  %v484_v47 = vpop.f32.mrf.mxu1 }
 0x134   : > { %881 = vpow2.f32 %v761_v35  ;;  %v762_v37 = vmul.f32 -1.442695, %v413_v36 }
 0x136   : > { %883 = vpow2.f32 %v762_v37 }
 0x141   : > { %v882_v38 = vpop.eup %881 }
 0x142   : > { %v493_v39 = vadd.f32 1.0, %v882_v38 }
 0x143   : > { %v884_v40 = vpop.eup %883 }
 0x144   : > { %885 = vrcp.f32 %v493_v39  ;;  %v494_v41 = vadd.f32 1.0, %v884_v40 }
 0x146   : > { %887 = vrcp.f32 %v494_v41 }
 0x151   : > { %v886_v42 = vpop.eup %885 }
 0x152   : > { %v499_v45 = vmul.f32 %v886_v42, %v411_v34 }
 0x153   : > { %v888_v44 = vpop.eup %887 }
 0x154   : > { %v500_v46 = vmul.f32 %v888_v44, %v413_v36  ;;  %v501_v49 = vmul.f32 %v499_v45, %v482_v43 }
 0x156   : > { %v502_v48 = vmul.f32 %v500_v46, %v484_v47 }
 0x158   : > { %599 = vmatprep.mubr.f32.mxu0 %v502_v48 }
 0x159   : > { %600 = vmatmul.mubr.f32.vlgmr.msra.gmra.mxu0 %v501_v49 }
 0x219   : > { %v801_v50 = vpop.f32.mrf.mxu0 }
 0x21b   : > { %v802_v51 = vpop.f32.mrf.mxu0 }
 0x21c   : > { %v803_v52 = vadd.f32 %v802_v51, %v801_v50 }
 0x21e   : > { %605 = vst [vmem:[%s279_s7] sm:$0xff] %v803_v52 }
 0x21f   : > { %986 = shalt.err (!%p983_p6)
}
 0x220   : > { %s987_s23 = scalar_lea.hbm %s619_s26, 128  ;;  %s991_s28 = scalar_lea.hbm %s1377_s3, 256 }
 0x221   : > { %p988_p7 = scmp.ne.s32.totalorder %s619_s26, %s987_s23  ;;  %p992_p2 = scmp.lt.s32.totalorder %s619_s26, %s1377_s3 }
 0x222   : > { %p993_p8 = scmp.lt.s32.totalorder %s991_s28, %s987_s23 }
 0x223   : > { %p989_p10 = pnand %p988_p7, %p1143_p9 }
 0x224   : > { %p994_p0 = por %p993_p8, %p992_p2 }
 0x225   : > { %p990_p13 = pneg %p989_p10 }
 0x227   : > { %p995_p12 = pnand %p994_p0, %p990_p13 }
 0x229   : > { %998 = shalt.err (!%p995_p12)
}
 0x22a   : > { %810 = dma.vmem_to_hbm [thread:$0]  (%p1143_p9), %s622_s9, 128, %s619_s26, %s607_s8  }
 0x22b PF: > { %s633_s5 = sand.u32 1, %s1037_s12   ;;  %p1389_p1 = scmp.ge.s32.totalorder %s1057_s17, 2 }
 0x22c   : > { %s634_s29 = scalar_lea.sflag [#allocation4], %s633_s5 }
 0x22d   : > { %p823_p3 = pnand %p1389_p1, %p1150_p11 }
 0x22f   : > { %p824_p4 = pneg %p823_p3 }
 0x231   : > { %1032 = dma.done.wait (%p824_p4), %s634_s29, 128  }
 0x232   : > { %1034 = vsyncadd (%p824_p4), %s634_s29, 4294967168  ;;  %s22_s17 = sadd.s32 1, %s1057_s17   ;;  %s1390_s18 = sld [smem:[#allocation13_spill]] }
 0x233   : > { %p19_p5 = scmp.ge.s32.totalorder %s22_s17, 4   ;;  %s1391_s25 = sld [smem:[#allocation12_spill]] }
 0x234   : > { %s1392_s12 = smov %s1041_s13  ;;  %s1393_s13 = smov %s1045_s14 }
 0x235   : > { %s1395_s15 = smov %s1053_s16  ;;  %21 = sbr.rel (!%p19_p5) target bundleno = 10 (0xa), region = 101 }
 0x238   : > { %s1394_s14 = smov %s1390_s18 }
 0x239   : > { %s1396_s16 = smov %s1391_s25 }
 0x23a   :  { %639 = vsyncpa [#allocation3], 1 }
 0x23b   :  { %641 = vsyncpa [#allocation3 + $0x1], 1 }
 0x23c   :  { %642 = vsyncpa [#allocation6], 1 }
 0x23d   :  { %644 = vsyncpa [#allocation6 + $0x1], 1 }
 0x23e   :  { %645 = vsyncpa [#allocation4], 1 }
 0x23f   :  { %647 = vsyncpa [#allocation4 + $0x1], 1 }

</bundles_post_ra>
